<compile_context>
chip_gen: v6e
topology: v6e:2x2x1
jax: 0.10.0
libtpu: 0.0.40
codegen_flags: <defaults>
</compile_context>

<pallas_src>
import jax
import jax.numpy as jnp
from jax.experimental import pallas as pl
from jax.experimental.pallas import tpu as pltpu


def _round_up(x, m):
    return ((x + m - 1) // m) * m


def classifier_kernel(x_ref, w1_ref, b1_ref, w2_ref, b2_ref, o_ref, acc_ref):
    k = pl.program_id(1)

    @pl.when(k == 0)
    def _init():
        acc_ref[...] = jnp.zeros_like(acc_ref)

    # Partial first matmul (bf16 inputs on the MXU, f32 accumulation).
    acc_ref[...] += jnp.dot(
        x_ref[...], w1_ref[...], preferred_element_type=jnp.float32
    )

    @pl.when(k == pl.num_programs(1) - 1)
    def _finalize():
        # Bias + ReLU in f32.
        h = jnp.maximum(acc_ref[...] + b1_ref[...], 0.0)

        # Second linear: bf16 MXU inputs, f32 accumulation, f32 bias.
        logits = (
            jnp.dot(h.astype(jnp.bfloat16), w2_ref[...],
                    preferred_element_type=jnp.float32)
            + b2_ref[...]
        )

        # Numerically stable log_softmax along the label (lane) axis.
        # Padded label lanes carry a -inf bias -> exp() == 0, lse unchanged.
        m = jnp.max(logits, axis=1, keepdims=True)
        shifted = logits - m
        lse = jnp.log(jnp.sum(jnp.exp(shifted), axis=1, keepdims=True))
        o_ref[...] = (shifted - lse).astype(o_ref.dtype)


def classifier_forward(x, w1, b1, w2, b2, *, tm=256, tk=512):
    """Forward of Classifier: log_softmax(relu(x @ w1.T + b1) @ w2.T + b2, axis=1).

    Args use the PyTorch nn.Linear layout:
      x:  (B, vocab)          f32 (or anything castable)
      w1: (hidden, vocab)     b1: (hidden,)
      w2: (labels, hidden)    b2: (labels,)
    """
    B, V = x.shape
    H = w1.shape[0]
    L = w2.shape[0]

    # ---- Padding to TPU-friendly, lane-dense shapes --------------------------
    tm = min(tm, _round_up(B, 8))        # sublane-aligned batch tile
    B_pad = _round_up(B, tm)
    tk = min(tk, _round_up(V, 128))      # lane-aligned vocab tile
    V_pad = _round_up(V, tk)
    H_pad = _round_up(H, 128)            # lane-dense hidden dim
    L_pad = _round_up(L, 128)            # lane-dense label dim (unmasked stores)

    # bf16 matmul operands (halves HBM traffic, MXU-native); f32 biases.
    x_p = jnp.zeros((B_pad, V_pad), jnp.bfloat16).at[:B, :V].set(
        x.astype(jnp.bfloat16))
    w1_t = jnp.zeros((V_pad, H_pad), jnp.bfloat16).at[:V, :H].set(
        w1.T.astype(jnp.bfloat16))
    b1_p = jnp.zeros((1, H_pad), jnp.float32).at[0, :H].set(
        b1.astype(jnp.float32))
    w2_t = jnp.zeros((H_pad, L_pad), jnp.bfloat16).at[:H, :L].set(
        w2.T.astype(jnp.bfloat16))
    # Padded label lanes must contribute exp(-inf)=0 to the softmax denominator.
    b2_p = jnp.full((1, L_pad), -jnp.inf, jnp.float32).at[0, :L].set(
        b2.astype(jnp.float32))

    grid = (B_pad // tm, V_pad // tk)

    out = pl.pallas_call(
        classifier_kernel,
        out_shape=jax.ShapeDtypeStruct((B_pad, L_pad), jnp.float32),
        grid_spec=pltpu.PrefetchScalarGridSpec(
            num_scalar_prefetch=0,
            grid=grid,
            in_specs=[
                pl.BlockSpec((tm, tk), lambda i, k: (i, k)),        # x tile
                pl.BlockSpec((tk, H_pad), lambda i, k: (k, 0)),     # W1^T tile
                pl.BlockSpec((1, H_pad), lambda i, k: (0, 0)),      # b1
                pl.BlockSpec((H_pad, L_pad), lambda i, k: (0, 0)),  # W2^T
                pl.BlockSpec((1, L_pad), lambda i, k: (0, 0)),      # b2
            ],
            out_specs=pl.BlockSpec((tm, L_pad), lambda i, k: (i, 0)),
            scratch_shapes=[pltpu.VMEM((tm, H_pad), jnp.float32)],  # f32 acc
        ),
        compiler_params=pltpu.CompilerParams(
            dimension_semantics=("parallel", "arbitrary"),
            vmem_limit_bytes=64 * 1024 * 1024,
        ),
    )(x_p, w1_t, b1_p, w2_t, b2_p)

    # Slice the padding back off.
    return out[:B, :L]


if __name__ == "__main__":
    # Small shapes consistent with the module's forward.
    batch = 8
    vocab_size = 128
    hidden_size = 32
    num_labels = 8

    key = jax.random.PRNGKey(0)
    k_x, k_w1, k_b1, k_w2, k_b2 = jax.random.split(key, 5)

    x = jax.random.normal(k_x, (batch, vocab_size), dtype=jnp.float32)

    # PyTorch nn.Linear stores weight as (out_features, in_features).
    w1 = jax.random.normal(k_w1, (hidden_size, vocab_size), dtype=jnp.float32) * 0.05
    b1 = jax.random.normal(k_b1, (hidden_size,), dtype=jnp.float32) * 0.05
    w2 = jax.random.normal(k_w2, (num_labels, hidden_size), dtype=jnp.float32) * 0.05
    b2 = jax.random.normal(k_b2, (num_labels,), dtype=jnp.float32) * 0.05

    out = classifier_forward(x, w1, b1, w2, b2)
    out = jax.block_until_ready(out)

    # Reference check in plain JAX (f32).  Tolerance accounts for bf16 MXU inputs.
    h_ref = jnp.maximum(x @ w1.T + b1, 0.0)
    logits_ref = h_ref @ w2.T + b2
    ref = jax.nn.log_softmax(logits_ref, axis=1)
    assert out.shape == ref.shape, f"shape mismatch: {out.shape} vs {ref.shape}"
    assert jnp.all(jnp.isfinite(out)), "non-finite values in output"
    assert jnp.allclose(out, ref, atol=5e-2, rtol=5e-2), "mismatch vs reference"

    print("KERNEL_OK")
</pallas_src>

<mosaic_0001>
module attributes {stable_mosaic.version = 11 : i64} {
  func.func @classifier_kernel(%arg0: i32, %arg1: i32, %arg2: memref<8x128xbf16, #tpu.memory_space<vmem>>, %arg3: memref<128x128xbf16, #tpu.memory_space<vmem>>, %arg4: memref<1x128xf32, #tpu.memory_space<vmem>>, %arg5: memref<128x128xbf16, #tpu.memory_space<vmem>>, %arg6: memref<1x128xf32, #tpu.memory_space<vmem>>, %arg7: memref<8x128xf32, #tpu.memory_space<vmem>>, %arg8: memref<8x128xf32, #tpu.memory_space<vmem>>) attributes {dimension_semantics = [#tpu.dimension_semantics<parallel>, #tpu.dimension_semantics<arbitrary>], iteration_bounds = array<i64: 1, 1>, scalar_prefetch = 0 : i64, scratch_operands = 1 : i64, tpu.core_type = #tpu.core_type<tc>, window_params = [{transform_indices = @transform_0, window_bounds = array<i64: 8, 128>}, {transform_indices = @transform_1, window_bounds = array<i64: 128, 128>}, {pipeline_mode = #tpu.pipeline_mode<synchronous>, transform_indices = @transform_2, window_bounds = array<i64: 1, 128>}, {pipeline_mode = #tpu.pipeline_mode<synchronous>, transform_indices = @transform_3, window_bounds = array<i64: 128, 128>}, {pipeline_mode = #tpu.pipeline_mode<synchronous>, transform_indices = @transform_4, window_bounds = array<i64: 1, 128>}, {transform_indices = @transform_5, window_bounds = array<i64: 8, 128>}]} {
    %c0_i32 = arith.constant 0 : i32
    %0 = arith.cmpi eq, %arg1, %c0_i32 : i32
    %1 = arith.extui %0 : i1 to i32
    %c0_i32_0 = arith.constant 0 : i32
    %2 = arith.cmpi ne, %1, %c0_i32_0 : i32
    scf.if %2 {
      %cst_10 = arith.constant 0.000000e+00 : f32
      %12 = vector.broadcast %cst_10 : f32 to vector<8x128xf32>
      %c0_11 = arith.constant 0 : index
      %c0_12 = arith.constant 0 : index
      %13 = vector.load %arg8[%c0_11, %c0_12] : memref<8x128xf32, #tpu.memory_space<vmem>>, vector<8x128xf32>
      tpu.vector_store %arg8[%c0_11, %c0_12], %12 {strides = array<i32>} : memref<8x128xf32, #tpu.memory_space<vmem>>, vector<8x128xf32>,
    } else {
    }
    %c0 = arith.constant 0 : index
    %c0_1 = arith.constant 0 : index
    %3 = vector.load %arg8[%c0, %c0_1] : memref<8x128xf32, #tpu.memory_space<vmem>>, vector<8x128xf32>
    %c0_2 = arith.constant 0 : index
    %c0_3 = arith.constant 0 : index
    %4 = vector.load %arg2[%c0_2, %c0_3] : memref<8x128xbf16, #tpu.memory_space<vmem>>, vector<8x128xbf16>
    %c0_4 = arith.constant 0 : index
    %c0_5 = arith.constant 0 : index
    %5 = vector.load %arg3[%c0_4, %c0_5] : memref<128x128xbf16, #tpu.memory_space<vmem>>, vector<128x128xbf16>
    %cst = arith.constant dense<0.000000e+00> : vector<8x128xf32>
    %6 = tpu.matmul %4, %5, %cst {dimension_numbers = #tpu.dot_dimension_numbers<[1], [0], [0], [1], [0, 0, 1, 1], [], []>} : vector<8x128xbf16>, vector<128x128xbf16>, vector<8x128xf32> -> vector<8x128xf32>
    %7 = arith.addf %3, %6 : vector<8x128xf32>
    %c0_6 = arith.constant 0 : index
    %c0_7 = arith.constant 0 : index
    %8 = vector.load %arg8[%c0_6, %c0_7] : memref<8x128xf32, #tpu.memory_space<vmem>>, vector<8x128xf32>
    tpu.vector_store %arg8[%c0_6, %c0_7], %7 {strides = array<i32>} : memref<8x128xf32, #tpu.memory_space<vmem>>, vector<8x128xf32>,
    %c0_i32_8 = arith.constant 0 : i32
    %9 = arith.cmpi eq, %arg1, %c0_i32_8 : i32
    %10 = arith.extui %9 : i1 to i32
    %c0_i32_9 = arith.constant 0 : i32
    %11 = arith.cmpi ne, %10, %c0_i32_9 : i32
    scf.if %11 {
      %c0_10 = arith.constant 0 : index
      %c0_11 = arith.constant 0 : index
      %12 = vector.load %arg8[%c0_10, %c0_11] : memref<8x128xf32, #tpu.memory_space<vmem>>, vector<8x128xf32>
      %c0_12 = arith.constant 0 : index
      %c0_13 = arith.constant 0 : index
      %13 = vector.load %arg4[%c0_12, %c0_13] : memref<1x128xf32, #tpu.memory_space<vmem>>, vector<1x128xf32>
      %14 = vector.broadcast %13 : vector<1x128xf32> to vector<8x128xf32>
      %15 = arith.addf %12, %14 : vector<8x128xf32>
      %cst_14 = arith.constant 0.000000e+00 : f32
      %16 = vector.broadcast %cst_14 : f32 to vector<8x128xf32>
      %17 = arith.maximumf %15, %16 : vector<8x128xf32>
      %18 = arith.truncf %17 : vector<8x128xf32> to vector<8x128xbf16>
      %c0_15 = arith.constant 0 : index
      %c0_16 = arith.constant 0 : index
      %19 = vector.load %arg5[%c0_15, %c0_16] : memref<128x128xbf16, #tpu.memory_space<vmem>>, vector<128x128xbf16>
      %cst_17 = arith.constant dense<0.000000e+00> : vector<8x128xf32>
      %20 = tpu.matmul %18, %19, %cst_17 {dimension_numbers = #tpu.dot_dimension_numbers<[1], [0], [0], [1], [0, 0, 1, 1], [], []>} : vector<8x128xbf16>, vector<128x128xbf16>, vector<8x128xf32> -> vector<8x128xf32>
      %c0_18 = arith.constant 0 : index
      %c0_19 = arith.constant 0 : index
      %21 = vector.load %arg6[%c0_18, %c0_19] : memref<1x128xf32, #tpu.memory_space<vmem>>, vector<1x128xf32>
      %22 = vector.broadcast %21 : vector<1x128xf32> to vector<8x128xf32>
      %23 = arith.addf %20, %22 : vector<8x128xf32>
      %cst_20 = arith.constant dense<0xFF800000> : vector<8xf32>
      %24 = vector.multi_reduction <maximumf>, %23, %cst_20 [1] : vector<8x128xf32> to vector<8xf32>
      %25 = vector.shape_cast %24 : vector<8xf32> to vector<8x1xf32>
      %26 = vector.broadcast %25 : vector<8x1xf32> to vector<8x128xf32>
      %27 = arith.subf %23, %26 : vector<8x128xf32>
      %28 = math.exp %27 : vector<8x128xf32>
      %cst_21 = arith.constant dense<0.000000e+00> : vector<8xf32>
      %29 = vector.multi_reduction <add>, %28, %cst_21 [1] : vector<8x128xf32> to vector<8xf32>
      %30 = vector.shape_cast %29 : vector<8xf32> to vector<8x1xf32>
      %31 = math.log %30 : vector<8x1xf32>
      %32 = vector.broadcast %31 : vector<8x1xf32> to vector<8x128xf32>
      %33 = arith.subf %27, %32 : vector<8x128xf32>
      %c0_22 = arith.constant 0 : index
      %c0_23 = arith.constant 0 : index
      %34 = vector.load %arg7[%c0_22, %c0_23] : memref<8x128xf32, #tpu.memory_space<vmem>>, vector<8x128xf32>
      tpu.vector_store %arg7[%c0_22, %c0_23], %33 {strides = array<i32>} : memref<8x128xf32, #tpu.memory_space<vmem>>, vector<8x128xf32>,
    } else {
    }
    return
  }
  func.func @transform_0(%arg0: i32, %arg1: i32) -> (i32, i32) {
    %c0_i32 = arith.constant 0 : i32
    return %arg0, %arg1 : i32, i32
  }
  func.func @transform_1(%arg0: i32, %arg1: i32) -> (i32, i32) {
    %c0_i32 = arith.constant 0 : i32
    %c0_i32_0 = arith.constant 0 : i32
    return %arg1, %c0_i32 : i32, i32
  }
  func.func @transform_2(%arg0: i32, %arg1: i32) -> (i32, i32) {
    %c0_i32 = arith.constant 0 : i32
    %c0_i32_0 = arith.constant 0 : i32
    %c0_i32_1 = arith.constant 0 : i32
    return %c0_i32, %c0_i32_0 : i32, i32
  }
  func.func @transform_3(%arg0: i32, %arg1: i32) -> (i32, i32) {
    %c0_i32 = arith.constant 0 : i32
    %c0_i32_0 = arith.constant 0 : i32
    %c0_i32_1 = arith.constant 0 : i32
    return %c0_i32, %c0_i32_0 : i32, i32
  }
  func.func @transform_4(%arg0: i32, %arg1: i32) -> (i32, i32) {
    %c0_i32 = arith.constant 0 : i32
    %c0_i32_0 = arith.constant 0 : i32
    %c0_i32_1 = arith.constant 0 : i32
    return %c0_i32, %c0_i32_0 : i32, i32
  }
  func.func @transform_5(%arg0: i32, %arg1: i32) -> (i32, i32) {
    %c0_i32 = arith.constant 0 : i32
    %c0_i32_0 = arith.constant 0 : i32
    return %arg0, %c0_i32 : i32, i32
  }
}

</mosaic_0001>

<bundles_post_ra>
// kernel: tpu_custom_call.1
= control target key start
LH: loop header
LB: loop body
LE: loop exit
PB: predicated region body
PF: predicated region fallthrough
CT: control target
= control target key end

     0   :  { %10 = vsyncpa [#allocation4], 0  ;;  %s572_s0 = inlined_call_operand.hbm [shape: bf16[8,128], index: 0, kind: input, shape index: {}]   ;;  %s573_s1 = inlined_call_operand.hbm [shape: bf16[128,128], index: 1, kind: input, shape index: {}]   ;;  %s574_s2 = inlined_call_operand.vmem [shape: f32[1,128], index: 2, kind: input, shape index: {}]   ;;  %s575_s3 = inlined_call_operand.hbm [shape: bf16[128,128], index: 3, kind: input, shape index: {}]   ;;  %s576_s4 = inlined_call_operand.vmem [shape: f32[1,128], index: 4, kind: input, shape index: {}]   ;;  %s577_s5 = inlined_call_operand.hbm [shape: f32[8,128], index: 5, kind: output, shape index: {}]  }
   0x1   :  { %11 = vsyncpa [#allocation7], 0 }
   0x2   :  { %12 = vsyncpa [#allocation5], 0  ;;  %s516_s18 = smov [#allocation6]  }
   0x3   :  { %s28_s19 = sshll.u32 %s516_s18, 4  ;;  %s29_s19 = int_to_ptr.vmem [resolvable:$true] %s28_s19 }
   0x4   :  { %s438_s20 = scalar_lea.vmem %s29_s19, 1024  ;;  %p443_p1 = scmp.lt.s32.totalorder %s29_s19, %s29_s19 }
   0x5   :  { %p439_p0 = scmp.ne.s32.totalorder %s29_s19, %s438_s20  ;;  %p444_p2 = scmp.lt.s32.totalorder %s438_s20, %s438_s20 }
   0x7   :  { %p445_p3 = por %p444_p2, %p443_p1 }
   0x9   :  { %p446_p4 = pnand %p445_p3, %p439_p0 }
   0xb   :  { %449 = shalt.err (!%p446_p4)
}
   0xc   :  { %s517_s21 = smov 64   ;;  %s518_s22 = smov 4  }
   0xd   :  { %34 = dma.hbm_to_vmem [thread:$0]  %s573_s1, 1024, %s29_s19, [#allocation7], %s517_s21, %s517_s21, %s518_s22  }
   0xe   :  { %s519_s25 = smov [#allocation3]   ;;  %s520_s27 = smov [#allocation8]  }
   0xf   :  { %s19_s26 = sshll.u32 %s519_s25, 4  ;;  %s42_s28 = sshll.u32 %s520_s27, 4  ;;  %s20_s26 = int_to_ptr.vmem [resolvable:$true] %s19_s26  ;;  %s43_s28 = int_to_ptr.vmem [resolvable:$true] %s42_s28 }
  0x10   :  { %s458_s29 = scalar_lea.vmem %s20_s26, 64  ;;  %p463_p6 = scmp.lt.s32.totalorder %s20_s26, %s20_s26 }
  0x11   :  { %p459_p5 = scmp.ne.s32.totalorder %s20_s26, %s458_s29  ;;  %p464_p7 = scmp.lt.s32.totalorder %s458_s29, %s458_s29 }
  0x13   :  { %p465_p8 = por %p464_p7, %p463_p6 }
  0x15   :  { %p466_p9 = pnand %p465_p8, %p459_p5 }
  0x17   :  { %469 = shalt.err (!%p466_p9)
}
  0x18   :  { %22 = dma.hbm_to_vmem [thread:$0]  %s572_s0, 64, %s20_s26, [#allocation4]  }
  0x19   :  { %s478_s7 = scalar_lea.vmem %s43_s28, 1024  ;;  %p483_p11 = scmp.lt.s32.totalorder %s43_s28, %s43_s28 }
  0x1a   :  { %p479_p10 = scmp.ne.s32.totalorder %s43_s28, %s478_s7  ;;  %p484_p12 = scmp.lt.s32.totalorder %s478_s7, %s478_s7 }
  0x1c   :  { %p485_p13 = por %p484_p12, %p483_p11 }
  0x1e   :  { %p486_p0 = pnand %p485_p13, %p479_p10 }
  0x20   :  { %489 = shalt.err (!%p486_p0)
}
  0x21   :  { %48 = dma.hbm_to_vmem [thread:$0]  %s575_s3, 1024, %s43_s28, [#allocation7], %s517_s21, %s517_s21, %s518_s22  }
  0x22   :  { %510 = dma.done.wait [#allocation4], 64  }
  0x23   :  { %511 = vsyncadd [#allocation4], 4294967232 }
  0x24   :  { %512 = dma.done.wait [#allocation7], 2048  }
  0x25   :  { %513 = vsyncadd [#allocation7], 4294965248  ;;  %v521_v0 = vmov 0.0   ;;  %vm522_vm0 = vmmov 0   ;;  %v410_v1 = vld [vmem:[#allocation6 + $0x38] sm:$0xff]   ;;  %v411_v2 = vld [vmem:[#allocation6 + $0x30] sm:$0xff]  }
  0x26   :  { %362 = vmatprep.subr.bf16.mxu0 %v521_v0  ;;  %378 = vmatprep.mubr.msk.bf16.mxu0 %vm522_vm0, %v521_v0  ;;  %v412_v3 = vld [vmem:[#allocation6 + $0x28] sm:$0xff]   ;;  %v418_v4 = vld [vmem:[#allocation8 + $0x38] sm:$0xff]   ;;  %v413_v5 = vld [vmem:[#allocation6 + $0x20] sm:$0xff]  }
  0x27   :  { %382 = vmatprep.subr.bf16.mxu1 %v521_v0  ;;  %398 = vmatprep.mubr.msk.bf16.mxu1 %vm522_vm0, %v521_v0  ;;  %v419_v6 = vld [vmem:[#allocation8 + $0x30] sm:$0xff]   ;;  %v414_v7 = vld [vmem:[#allocation6 + $0x18] sm:$0xff]   ;;  %v420_v8 = vld [vmem:[#allocation8 + $0x28] sm:$0xff]  }
  0x28   :  { %363 = vmatpush3.bf16.msra.mxu0 %v410_v1  ;;  %383 = vmatpush3.bf16.msra.mxu1 %v418_v4  ;;  %v415_v9 = vld [vmem:[#allocation6 + $0x10] sm:$0xff]   ;;  %v421_v10 = vld [vmem:[#allocation8 + $0x20] sm:$0xff]   ;;  %v416_v11 = vld [vmem:[#allocation6 + $0x8] sm:$0xff]  }
  0x29   :  { %364 = vmatprep.subr.bf16.mxu0 %v521_v0  ;;  %384 = vmatprep.subr.bf16.mxu1 %v521_v0  ;;  %v422_v12 = vld [vmem:[#allocation8 + $0x18] sm:$0xff]   ;;  %v417_v13 = vld [vmem:[#allocation6] sm:$0xff]   ;;  %v423_v14 = vld [vmem:[#allocation8 + $0x10] sm:$0xff]  }
  0x2a   :  { %v67_v15 = vld [vmem:[#allocation3] sm:$0xf]  ;;  %v424_v16 = vld [vmem:[#allocation8 + $0x8] sm:$0xff]   ;;  %v425_v17 = vld [vmem:[#allocation8] sm:$0xff]  }
  0x2b   :  { %v334_v18 = vld [vmem:[%s574_s2] ss:$0 sm:$0xff]  ;;  %s523_s2 = smov [#allocation9]  }
  0x2c   :  { %365 = vmatpush3.bf16.msra.mxu0 %v411_v2  ;;  %385 = vmatpush3.bf16.msra.mxu1 %v419_v6  ;;  %v335_v26 = vld [vmem:[%s576_s4] ss:$0 sm:$0xff]  ;;  %s316_s11 = sshll.u32 %s523_s2, 4  ;;  %s317_s11 = int_to_ptr.vmem [resolvable:$true] %s316_s11 }
  0x2d   :  { %366 = vmatprep.subr.bf16.mxu0 %v521_v0  ;;  %386 = vmatprep.subr.bf16.mxu1 %v521_v0  ;;  %s490_s4 = scalar_lea.vmem %s317_s11, 128  ;;  %p495_p2 = scmp.lt.s32.totalorder %s317_s11, %s317_s11 }
  0x2e   :  { %p491_p1 = scmp.ne.s32.totalorder %s317_s11, %s490_s4  ;;  %p496_p3 = scmp.lt.s32.totalorder %s490_s4, %s490_s4 }
  0x30   :  { %367 = vmatpush3.bf16.msra.mxu0 %v412_v3  ;;  %387 = vmatpush3.bf16.msra.mxu1 %v420_v8  ;;  %p497_p4 = por %p496_p3, %p495_p2 }
  0x31   :  { %368 = vmatprep.subr.bf16.mxu0 %v521_v0  ;;  %388 = vmatprep.subr.bf16.mxu1 %v521_v0 }
  0x32   :  { %p498_p5 = pnand %p497_p4, %p491_p1 }
  0x34   :  { %369 = vmatpush3.bf16.msra.mxu0 %v413_v5  ;;  %389 = vmatpush3.bf16.msra.mxu1 %v421_v10 }
  0x35   :  { %370 = vmatprep.subr.bf16.mxu0 %v521_v0  ;;  %390 = vmatprep.subr.bf16.mxu1 %v521_v0 }
  0x38   :  { %371 = vmatpush3.bf16.msra.mxu0 %v414_v7  ;;  %391 = vmatpush3.bf16.msra.mxu1 %v422_v12 }
  0x39   :  { %372 = vmatprep.subr.bf16.mxu0 %v521_v0  ;;  %392 = vmatprep.subr.bf16.mxu1 %v521_v0 }
  0x3c   :  { %373 = vmatpush3.bf16.msra.mxu0 %v415_v9  ;;  %393 = vmatpush3.bf16.msra.mxu1 %v423_v14 }
  0x3d   :  { %374 = vmatprep.subr.bf16.mxu0 %v521_v0  ;;  %394 = vmatprep.subr.bf16.mxu1 %v521_v0 }
  0x40   :  { %375 = vmatpush3.bf16.msra.mxu0 %v416_v11  ;;  %395 = vmatpush3.bf16.msra.mxu1 %v424_v16 }
  0x41   :  { %376 = vmatprep.subr.bf16.mxu0 %v521_v0  ;;  %396 = vmatprep.subr.bf16.mxu1 %v521_v0 }
  0x44   :  { %377 = vmatpush3.bf16.msra.mxu0 %v417_v13  ;;  %397 = vmatpush3.bf16.msra.mxu1 %v425_v17 }
  0x47   :  { %379 = vmatmul.mubr.bf16.vlgmr.msra.gmra.mxu0 %v67_v15 }
 0x107   :  { %v166_v19 = vpop.f32.mrf.mxu0 }
 0x108   :  { %v185_v20 = vadd.f32 %v334_v18, %v166_v19 }
 0x109   :  { %v380_v21 = vpop.f32.mrf.mxu0 }
 0x10a   :  { %v186_v22 = vmax.f32 %v185_v20, 0.0 }
 0x10b   :  { %v169_v23 = vpop.f32.mrf.mxu0 }
 0x10c   :  { %v187_v24 = vpack.c.bf16 %v186_v22, %v186_v22 }
 0x10d   :  { %v381_v25 = vpop.f32.mrf.mxu0 }
 0x10e   :  { %399 = vmatmul.mubr.bf16.vlgmr.msra.gmra.mxu1 %v187_v24 }
 0x1ce   :  { %v293_v27 = vpop.f32.mrf.mxu1 }
 0x1cf   :  { %v294_v28 = vadd.f32 %v335_v26, %v293_v27 }
 0x1d0   :  { %v400_v29 = vpop.f32.mrf.mxu1 }
 0x1d1   :  { %299 = vmax.xlane.f32.xlu0 %v294_v28 }
 0x1d2   :  { %v296_v30 = vpop.f32.mrf.mxu1 }
 0x1d4   :  { %v401_v31 = vpop.f32.mrf.mxu1 }
 0x25a   :  { %v300_v32 = vpop.xlane.xlu0 %299 }
 0x25b   :  { %v301_v33 = vsub.f32 %v294_v28, %v300_v32 }
 0x25d   :  { %v302_v34 = vmul.f32 1.442695, %v301_v33 }
 0x25f   :  { %426 = vpow2.f32 %v302_v34 }
 0x26c   :  { %v427_v35 = vpop.eup %426 }
 0x26d   :  { %304 = vadd.xlane.f32.xlu0 %v427_v35 }
 0x2f6   :  { %v305_v36 = vpop.xlane.xlu0 %304 }
 0x2f7   :  { %428 = vlog2.f32 %v305_v36 }
 0x304   :  { %v429_v37 = vpop.eup %428 }
 0x305   :  { %v307_v38 = vmul.f32 0.6931472, %v429_v37 }
 0x307   :  { %v308_v39 = vsub.f32 %v301_v33, %v307_v38 }
 0x309   :  { %309 = vst [vmem:[#allocation9] sm:$0xff] %v308_v39 }
 0x30a   :  { %501 = shalt.err (!%p498_p5)
}
 0x30b   :  { %319 = dma.vmem_to_hbm [thread:$0]  %s317_s11, 128, %s577_s5, [#allocation5]  }
 0x30c   :  { %514 = dma.done.wait [#allocation5], 128  }
 0x30d   :  { %515 = vsyncadd [#allocation5], 4294967168 }
 0x30e   :  { %323 = vsyncpa [#allocation4], 1 }
 0x30f   :  { %324 = vsyncpa [#allocation7], 1 }
 0x310   :  { %325 = vsyncpa [#allocation5], 1 }

</bundles_post_ra>
